<compile_context>
chip_gen: v5e
topology: v5e:2x2
jax: 0.10.0
libtpu: 0.0.40
codegen_flags: <defaults>
</compile_context>

<pallas_src>
import functools
import math

import jax
import jax.numpy as jnp
from jax.experimental import pallas as pl
from jax.experimental.pallas import tpu as pltpu


def _gelu_tanh(h):
    # PyTorch nn.GELU(approximate='tanh'), computed in f32 (tanh -> EUP).
    c = math.sqrt(2.0 / math.pi)
    return 0.5 * h * (1.0 + jnp.tanh(c * (h + 0.044715 * h * h * h)))


def mlp_kernel(x_ref, w_fc_ref, b_fc_ref, w_proj_ref, b_proj_ref, o_ref,
               acc_ref):
    # x_ref:      (TM, C)   bf16 row tile (resident across the hidden axis)
    # w_fc_ref:   (C, TH)   bf16 hidden chunk of c_fc weight
    # b_fc_ref:   (1, TH)   f32  hidden chunk of c_fc bias
    # w_proj_ref: (TH, C)   bf16 hidden chunk of c_proj weight
    # b_proj_ref: (1, C)    f32  c_proj bias (resident)
    # o_ref:      (TM, C)   output tile (written on the last hidden chunk)
    # acc_ref:    (TM, C)   f32 accumulator scratch
    j = pl.program_id(1)

    @pl.when(j == 0)
    def _():
        acc_ref[...] = jnp.zeros_like(acc_ref)

    # c_fc chunk: bf16 MXU matmul, f32 accumulate, bias + GELU in f32.
    h = jnp.dot(x_ref[...], w_fc_ref[...], preferred_element_type=jnp.float32)
    h = _gelu_tanh(h + b_fc_ref[...])

    # c_proj chunk: cast the GELU slab back to bf16 and fold into the
    # f32 accumulator.
    h = h.astype(w_proj_ref.dtype)
    acc_ref[...] += jnp.dot(h, w_proj_ref[...],
                            preferred_element_type=jnp.float32)

    @pl.when(j == pl.num_programs(1) - 1)
    def _():
        o_ref[...] = (acc_ref[...] + b_proj_ref[...]).astype(o_ref.dtype)


def _pick_row_tile(m):
    for tm in (512, 256, 128, 64, 32, 16, 8):
        if m % tm == 0:
            return tm
    # Single full-size block (block dim == array dim is legal).
    return m


def _pick_hidden_tile(h):
    for th in (1024, 768, 512, 384, 256, 128):
        if h % th == 0:
            return th
    return h


def mlp(x, w_fc, b_fc, w_proj, b_proj, *, compute_dtype=jnp.bfloat16,
        block_rows=None, block_hidden=None):
    """MLP forward.  x: (B, T, C); w_fc: (C, 4C); w_proj: (4C, C)."""
    B, T, C = x.shape
    H = w_fc.shape[1]
    M = B * T
    TM = block_rows if block_rows is not None else _pick_row_tile(M)
    TH = block_hidden if block_hidden is not None else _pick_hidden_tile(H)
    assert M % TM == 0 and H % TH == 0

    # Host-side dtype/layout plumbing: bf16 activations & weights for the MXU,
    # f32 biases reshaped to (1, N) for a lane-major 2-D layout.
    x2 = x.reshape(M, C).astype(compute_dtype)
    w_fc_c = w_fc.astype(compute_dtype)
    w_proj_c = w_proj.astype(compute_dtype)
    b_fc_c = b_fc.reshape(1, H).astype(jnp.float32)
    b_proj_c = b_proj.reshape(1, C).astype(jnp.float32)

    grid = (M // TM, H // TH)

    in_specs = [
        pl.BlockSpec((TM, C), lambda i, j: (i, 0)),   # x row tile (resident over j)
        pl.BlockSpec((C, TH), lambda i, j: (0, j)),   # w_fc   hidden chunk
        pl.BlockSpec((1, TH), lambda i, j: (0, j)),   # b_fc   hidden chunk
        pl.BlockSpec((TH, C), lambda i, j: (j, 0)),   # w_proj hidden chunk
        pl.BlockSpec((1, C), lambda i, j: (0, 0)),    # b_proj (resident)
    ]
    out_specs = pl.BlockSpec((TM, C), lambda i, j: (i, 0))

    itemsize_out = jnp.dtype(x.dtype).itemsize
    cost = pl.CostEstimate(
        flops=2 * M * C * H + 2 * M * H * C,
        transcendentals=M * H,                       # tanh per hidden element
        bytes_accessed=(M * C * 2                    # x (bf16)
                        + M * C * itemsize_out       # out
                        + (C * H + H * C) * 2        # weights (bf16)
                        + (H + C) * 4),              # biases (f32)
    )

    out = pl.pallas_call(
        mlp_kernel,
        out_shape=jax.ShapeDtypeStruct((M, C), x.dtype),
        grid_spec=pltpu.PrefetchScalarGridSpec(
            num_scalar_prefetch=0,
            grid=grid,
            in_specs=in_specs,
            out_specs=out_specs,
            scratch_shapes=[pltpu.VMEM((TM, C), jnp.float32)],
        ),
        compiler_params=pltpu.CompilerParams(
            dimension_semantics=("parallel", "arbitrary"),
            vmem_limit_bytes=64 * 1024 * 1024,
        ),
        cost_estimate=cost,
    )(x2, w_fc_c, b_fc_c, w_proj_c, b_proj_c)

    return out.reshape(B, T, C)


# ---------------- pure-JAX reference (f32) ----------------
def mlp_ref(x, w_fc, b_fc, w_proj, b_proj):
    h = x @ w_fc + b_fc
    c = math.sqrt(2.0 / math.pi)
    h = 0.5 * h * (1.0 + jnp.tanh(c * (h + 0.044715 * h ** 3)))
    return h @ w_proj + b_proj


if __name__ == "__main__":
    # Small shapes consistent with the module; C and the hidden tile are kept
    # multiples of 128 so the lane axis is dense.
    B, T, C = 2, 16, 128
    H = 4 * C

    key = jax.random.PRNGKey(0)
    k_x, k1, k2, k3, k4 = jax.random.split(key, 5)

    def w(k, shape):
        return (0.02 * jax.random.normal(k, shape)).astype(jnp.float32)

    x = jax.random.normal(k_x, (B, T, C), jnp.float32)
    w_fc = w(k1, (C, H))            # stored (in, out): row-major x @ W
    b_fc = w(k2, (H,))
    w_proj = w(k3, (H, C))
    b_proj = w(k4, (C,))

    # block_hidden=256 forces 2 hidden-chunk grid steps, exercising the
    # accumulator init / reduce / finalize path.
    out = mlp(x, w_fc, b_fc, w_proj, b_proj, block_hidden=256)
    out = jax.block_until_ready(out)

    ref = mlp_ref(x, w_fc, b_fc, w_proj, b_proj)
    # bf16 matmul inputs (f32 accumulation) vs. a pure-f32 reference.
    assert jnp.allclose(out, ref, atol=1e-2, rtol=1e-2), "mismatch vs reference"

    print("KERNEL_OK")
</pallas_src>

<mosaic_0001>
module attributes {stable_mosaic.version = 11 : i64} {
  func.func @mlp_kernel(%arg0: i32, %arg1: i32, %arg2: memref<32x128xbf16, #tpu.memory_space<vmem>>, %arg3: memref<128x256xbf16, #tpu.memory_space<vmem>>, %arg4: memref<1x256xf32, #tpu.memory_space<vmem>>, %arg5: memref<256x128xbf16, #tpu.memory_space<vmem>>, %arg6: memref<1x128xf32, #tpu.memory_space<vmem>>, %arg7: memref<32x128xf32, #tpu.memory_space<vmem>>, %arg8: memref<32x128xf32, #tpu.memory_space<vmem>>) attributes {dimension_semantics = [#tpu.dimension_semantics<parallel>, #tpu.dimension_semantics<arbitrary>], iteration_bounds = array<i64: 1, 2>, scalar_prefetch = 0 : i64, scratch_operands = 1 : i64, tpu.core_type = #tpu.core_type<tc>, window_params = [{transform_indices = @transform_0, window_bounds = array<i64: 32, 128>}, {transform_indices = @transform_1, window_bounds = array<i64: 128, 256>}, {transform_indices = @transform_2, window_bounds = array<i64: 1, 256>}, {transform_indices = @transform_3, window_bounds = array<i64: 256, 128>}, {pipeline_mode = #tpu.pipeline_mode<synchronous>, transform_indices = @transform_4, window_bounds = array<i64: 1, 128>}, {transform_indices = @transform_5, window_bounds = array<i64: 32, 128>}]} {
    %c0_i32 = arith.constant 0 : i32
    %0 = arith.cmpi eq, %arg1, %c0_i32 : i32
    %1 = arith.extui %0 : i1 to i32
    %c0_i32_0 = arith.constant 0 : i32
    %2 = arith.cmpi ne, %1, %c0_i32_0 : i32
    scf.if %2 {
      %cst_18 = arith.constant 0.000000e+00 : f32
      %31 = vector.broadcast %cst_18 : f32 to vector<32x128xf32>
      %c0_19 = arith.constant 0 : index
      %c0_20 = arith.constant 0 : index
      %32 = vector.load %arg8[%c0_19, %c0_20] : memref<32x128xf32, #tpu.memory_space<vmem>>, vector<32x128xf32>
      tpu.vector_store %arg8[%c0_19, %c0_20], %31 {strides = array<i32>} : memref<32x128xf32, #tpu.memory_space<vmem>>, vector<32x128xf32>,
    } else {
    }
    %c0 = arith.constant 0 : index
    %c0_1 = arith.constant 0 : index
    %3 = vector.load %arg2[%c0, %c0_1] : memref<32x128xbf16, #tpu.memory_space<vmem>>, vector<32x128xbf16>
    %c0_2 = arith.constant 0 : index
    %c0_3 = arith.constant 0 : index
    %4 = vector.load %arg3[%c0_2, %c0_3] : memref<128x256xbf16, #tpu.memory_space<vmem>>, vector<128x256xbf16>
    %cst = arith.constant dense<0.000000e+00> : vector<32x256xf32>
    %5 = tpu.matmul %3, %4, %cst {dimension_numbers = #tpu.dot_dimension_numbers<[1], [0], [0], [1], [0, 0, 1, 1], [], []>} : vector<32x128xbf16>, vector<128x256xbf16>, vector<32x256xf32> -> vector<32x256xf32>
    %c0_4 = arith.constant 0 : index
    %c0_5 = arith.constant 0 : index
    %6 = vector.load %arg4[%c0_4, %c0_5] : memref<1x256xf32, #tpu.memory_space<vmem>>, vector<1x256xf32>
    %7 = vector.broadcast %6 : vector<1x256xf32> to vector<32x256xf32>
    %8 = arith.addf %5, %7 : vector<32x256xf32>
    %cst_6 = arith.constant 5.000000e-01 : f32
    %9 = vector.broadcast %cst_6 : f32 to vector<32x256xf32>
    %10 = arith.mulf %9, %8 : vector<32x256xf32>
    %cst_7 = arith.constant 4.471500e-02 : f32
    %11 = vector.broadcast %cst_7 : f32 to vector<32x256xf32>
    %12 = arith.mulf %11, %8 : vector<32x256xf32>
    %13 = arith.mulf %12, %8 : vector<32x256xf32>
    %14 = arith.mulf %13, %8 : vector<32x256xf32>
    %15 = arith.addf %8, %14 : vector<32x256xf32>
    %cst_8 = arith.constant 0.797884583 : f32
    %16 = vector.broadcast %cst_8 : f32 to vector<32x256xf32>
    %17 = arith.mulf %16, %15 : vector<32x256xf32>
    %18 = math.tanh %17 : vector<32x256xf32>
    %cst_9 = arith.constant 1.000000e+00 : f32
    %19 = vector.broadcast %cst_9 : f32 to vector<32x256xf32>
    %20 = arith.addf %19, %18 : vector<32x256xf32>
    %21 = arith.mulf %10, %20 : vector<32x256xf32>
    %22 = arith.truncf %21 : vector<32x256xf32> to vector<32x256xbf16>
    %c0_10 = arith.constant 0 : index
    %c0_11 = arith.constant 0 : index
    %23 = vector.load %arg8[%c0_10, %c0_11] : memref<32x128xf32, #tpu.memory_space<vmem>>, vector<32x128xf32>
    %c0_12 = arith.constant 0 : index
    %c0_13 = arith.constant 0 : index
    %24 = vector.load %arg5[%c0_12, %c0_13] : memref<256x128xbf16, #tpu.memory_space<vmem>>, vector<256x128xbf16>
    %cst_14 = arith.constant dense<0.000000e+00> : vector<32x128xf32>
    %25 = tpu.matmul %22, %24, %cst_14 {dimension_numbers = #tpu.dot_dimension_numbers<[1], [0], [0], [1], [0, 0, 1, 1], [], []>} : vector<32x256xbf16>, vector<256x128xbf16>, vector<32x128xf32> -> vector<32x128xf32>
    %26 = arith.addf %23, %25 : vector<32x128xf32>
    %c0_15 = arith.constant 0 : index
    %c0_16 = arith.constant 0 : index
    %27 = vector.load %arg8[%c0_15, %c0_16] : memref<32x128xf32, #tpu.memory_space<vmem>>, vector<32x128xf32>
    tpu.vector_store %arg8[%c0_15, %c0_16], %26 {strides = array<i32>} : memref<32x128xf32, #tpu.memory_space<vmem>>, vector<32x128xf32>,
    %c1_i32 = arith.constant 1 : i32
    %28 = arith.cmpi eq, %arg1, %c1_i32 : i32
    %29 = arith.extui %28 : i1 to i32
    %c0_i32_17 = arith.constant 0 : i32
    %30 = arith.cmpi ne, %29, %c0_i32_17 : i32
    scf.if %30 {
      %c0_18 = arith.constant 0 : index
      %c0_19 = arith.constant 0 : index
      %31 = vector.load %arg8[%c0_18, %c0_19] : memref<32x128xf32, #tpu.memory_space<vmem>>, vector<32x128xf32>
      %c0_20 = arith.constant 0 : index
      %c0_21 = arith.constant 0 : index
      %32 = vector.load %arg6[%c0_20, %c0_21] : memref<1x128xf32, #tpu.memory_space<vmem>>, vector<1x128xf32>
      %33 = vector.broadcast %32 : vector<1x128xf32> to vector<32x128xf32>
      %34 = arith.addf %31, %33 : vector<32x128xf32>
      %c0_22 = arith.constant 0 : index
      %c0_23 = arith.constant 0 : index
      %35 = vector.load %arg7[%c0_22, %c0_23] : memref<32x128xf32, #tpu.memory_space<vmem>>, vector<32x128xf32>
      tpu.vector_store %arg7[%c0_22, %c0_23], %34 {strides = array<i32>} : memref<32x128xf32, #tpu.memory_space<vmem>>, vector<32x128xf32>,
    } else {
    }
    return
  }
  func.func @transform_0(%arg0: i32, %arg1: i32) -> (i32, i32) {
    %c0_i32 = arith.constant 0 : i32
    %c0_i32_0 = arith.constant 0 : i32
    return %arg0, %c0_i32 : i32, i32
  }
  func.func @transform_1(%arg0: i32, %arg1: i32) -> (i32, i32) {
    %c0_i32 = arith.constant 0 : i32
    %c0_i32_0 = arith.constant 0 : i32
    return %c0_i32, %arg1 : i32, i32
  }
  func.func @transform_2(%arg0: i32, %arg1: i32) -> (i32, i32) {
    %c0_i32 = arith.constant 0 : i32
    %c0_i32_0 = arith.constant 0 : i32
    return %c0_i32, %arg1 : i32, i32
  }
  func.func @transform_3(%arg0: i32, %arg1: i32) -> (i32, i32) {
    %c0_i32 = arith.constant 0 : i32
    %c0_i32_0 = arith.constant 0 : i32
    return %arg1, %c0_i32 : i32, i32
  }
  func.func @transform_4(%arg0: i32, %arg1: i32) -> (i32, i32) {
    %c0_i32 = arith.constant 0 : i32
    %c0_i32_0 = arith.constant 0 : i32
    %c0_i32_1 = arith.constant 0 : i32
    return %c0_i32, %c0_i32_0 : i32, i32
  }
  func.func @transform_5(%arg0: i32, %arg1: i32) -> (i32, i32) {
    %c0_i32 = arith.constant 0 : i32
    %c0_i32_0 = arith.constant 0 : i32
    return %arg0, %c0_i32 : i32, i32
  }
}

</mosaic_0001>

<bundles_post_ra>
// kernel: tpu_custom_call.1
= control target key start
LH: loop header
LB: loop body
LE: loop exit
PB: predicated region body
PF: predicated region fallthrough
CT: control target
= control target key end

     0   :  { %s1708_s0 = inlined_call_operand.hbm [shape: bf16[32,128], index: 0, kind: input, shape index: {}]   ;;  %s1709_s1 = inlined_call_operand.hbm [shape: bf16[128,512], index: 1, kind: input, shape index: {}]   ;;  %s1710_s2 = inlined_call_operand.hbm [shape: f32[1,512], index: 2, kind: input, shape index: {}]   ;;  %s1711_s3 = inlined_call_operand.hbm [shape: bf16[512,128], index: 3, kind: input, shape index: {}]   ;;  %s1712_s4 = inlined_call_operand.vmem [shape: f32[1,128], index: 4, kind: input, shape index: {}]   ;;  %s1713_s5 = inlined_call_operand.hbm [shape: f32[32,128], index: 5, kind: output, shape index: {}]  }
   0x1   :  { %1718 = sst [smem:[#allocation20_spill]] %s1708_s0 }
   0x2   :  { %1719 = sst [smem:[#allocation21_spill]] %s1709_s1 }
   0x3   :  { %10 = vsyncpa [#allocation4], 0 }
   0x4   :  { %11 = vsyncpa [#allocation7], 0 }
   0x5   :  { %13 = vsyncpa [#allocation7 + $0x1], 0 }
   0x6   :  { %14 = vsyncpa [#allocation10], 0 }
   0x7   :  { %16 = vsyncpa [#allocation10 + $0x1], 0 }
   0x8   :  { %17 = vsyncpa [#allocation5], 0  ;;  %s1483_s18 = smov 0   ;;  %s1485_s19 = smov 0  }
   0x9   :  { %s1487_s20 = smov 0   ;;  %s1489_s21 = smov 0  }
   0xa   :  { %s1491_s22 = smov 0   ;;  %s1493_s23 = smov 0  }
   0xb LB: > { %1720 = sst [smem:[#allocation16_spill]] %s1429_s20  ;;  %s32_s24 = sadd.s32 1, %s1437_s22  ;;  %s1441_s23 = sphi %s1493_s23, %s23_s23   ;;  %s1437_s22 = sphi %s1491_s22, %s1738_s22   ;;  %s1433_s21 = sphi %s1489_s21, %s1737_s21   ;;  %s1429_s20 = sphi %s1487_s20, %s1733_s20   ;;  %s1425_s19 = sphi %s1485_s19, %s1736_s19   ;;  %s1421_s18 = sphi %s1483_s18, %s1735_s18  }
   0xc   : > { %1721 = sst [smem:[#allocation17_spill]] %s1441_s23  ;;  %s68_s25 = sadd.s32 1, %s1429_s20 }
   0xd   : > { %p33_p0 = scmp.ge.s32.totalorder %s32_s24, 2  ;;  %p75_p1 = scmp.ne.s32.totalorder %s1429_s20, %s1425_s19 }
   0xe   : > { %p76_p2 = scmp.eq.s32.totalorder %s1441_s23, 0  ;;  %p1152_p4 = scmp.lt.s32.totalorder %s1441_s23, 2 }
   0xf   : > { %s1740_s24 = smov (%p33_p0, %s32_s24), 0  ;;  %s224_s28 = sand.u32 1, %s1441_s23  }
  0x10   : > { %1722 = sst [smem:[#allocation18_spill]] %s1740_s24  ;;  %p1520_p3 = por %p76_p2, %p75_p1 }
  0x11   : > { %s65_s27 = ssub.s32 %s1437_s22, %s1740_s24  ;;  %s1529_s29 = sand.u32 1, %s1429_s20  }
  0x12   : > { %p66_p5 = scmp.eq.s32.totalorder %s65_s27, 0  ;;  %s1087_s30 = sshll.u32 %s1437_s22, 3 }
  0x13   : > { %s1714_s7 = sshll.u32 %s1529_s29, 7  ;;  %s1725_s1 = sld [smem:[#allocation21_spill]] }
  0x14   : > { %s1533_s6 = scalar_select %p66_p5, %s1429_s20, %s68_s25  }
  0x15   : > { %s228_s12 = scalar_lea.vmem [#allocation6], %s1714_s7  ;;  %p1545_p6 = pnand %p1152_p4, %p1520_p3 }
  0x16   : > { %1724 = sst [smem:[#allocation19_spill]] %s1533_s6  ;;  %s236_s13 = sshll.u32 %s228_s12, 4  ;;  %s237_s13 = int_to_ptr.vmem [resolvable:$true] %s236_s13 }
  0x17   : > { %s1549_s15 = scalar_lea.sflag [#allocation7], %s224_s28  ;;  %s1443_s16 = smov 256  }
  0x18   : > { %s1444_s17 = smov 128   ;;  %s1445_s25 = smov 8  }
  0x19   : > { %s233_s10 = scalar_lea.hbm %s1725_s1, %s1087_s30  ;;  %s1555_s27 = sadd.s32 4294967295, %s1441_s23  }
  0x1a   : > { %s234_s11 = sshll.u32 %s233_s10, 4  ;;  %p81_p7 = scmp.ne.s32.totalorder %s1425_s19, %s1421_s18  ;;  %s235_s11 = int_to_ptr.hbm [resolvable:$true] %s234_s11 }
  0x1b   : > { %1144 = dma.hbm_to_vmem [thread:$0]  (!%p1545_p6), %s235_s11, 2048, %s237_s13, %s1549_s15, %s1443_s16, %s1444_s17, %s1445_s25  }
  0x1c   : > { %p82_p8 = scmp.eq.s32.totalorder %s1555_s27, 0  ;;  %p929_p9 = scmp.ge.s32.totalorder %s1441_s23, 1 }
  0x1d   : > { %p191_p10 = scmp.lt.s32.totalorder %s1441_s23, 3  ;;  %s1728_s0 = sld [smem:[#allocation20_spill]] }
  0x1e   : > { %p1564_p11 = por %p82_p8, %p81_p7  ;;  %s1446_s18 = smov [#allocation3]  }
  0x1f   : > { %p1571_p12 = pnand %p929_p9, %p191_p10  ;;  %s207_s10 = sshll.u32 %s1446_s18, 4  ;;  %s208_s10 = int_to_ptr.vmem [resolvable:$true] %s207_s10 }
  0x20   : > { %s935_s11 = sshll.u32 %s1529_s29, 1  ;;  %s936_s12 = sshll.u32 %s1437_s22, 1 }
  0x21   : > { %p1137_p13 = pneg %p1571_p12  ;;  %s254_s17 = scalar_lea.hbm %s1710_s2, %s936_s12 }
  0x22   : > { %s1447_s25 = smov 64   ;;  %s1448_s28 = smov 4  }
  0x23   : > { %s205_s8 = sshll.u32 %s1728_s0, 4  ;;  %p1138_p0 = pnand %p1137_p13, %p82_p8  ;;  %s206_s8 = int_to_ptr.hbm [resolvable:$true] %s205_s8 }
  0x24   : > { %s256_s30 = sshll.u32 %s254_s17, 4  ;;  %s250_s7 = scalar_lea.vmem [#allocation8], %s935_s11  ;;  %s257_s30 = int_to_ptr.hbm [resolvable:$true] %s256_s30 }
  0x25   : > { %1140 = dma.hbm_to_vmem [thread:$0]  (!%p1138_p0), %s206_s8, 256, %s208_s10, [#allocation4], %s1447_s25, %s1447_s25, %s1448_s28  }
  0x26   : > { %s258_s0 = sshll.u32 %s250_s7, 4  ;;  %s1088_s18 = sshll.u32 %s1437_s22, 7  ;;  %s259_s0 = int_to_ptr.vmem [resolvable:$true] %s258_s0 }
  0x27   : > { %1147 = dma.hbm_to_vmem [thread:$0]  (!%p1545_p6), %s257_s30, 32, %s259_s0, %s1549_s15  }
  0x28   : > { %s1730_s1 = sshll.u32 %s1529_s29, 7  ;;  %s274_s12 = scalar_lea.hbm %s1711_s3, %s1088_s18 }
  0x29   : > { %s269_s24 = scalar_lea.vmem [#allocation9], %s1730_s1  ;;  %s275_s13 = sshll.u32 %s274_s12, 4  ;;  %s276_s13 = int_to_ptr.hbm [resolvable:$true] %s275_s13 }
  0x2a   : > { %s277_s6 = sshll.u32 %s269_s24, 4  ;;  %s266_s16 = scalar_lea.sflag [#allocation10], %s1529_s29  ;;  %s278_s6 = int_to_ptr.vmem [resolvable:$true] %s277_s6 }
  0x2b   : > { %1150 = dma.hbm_to_vmem [thread:$0]  (!%p1545_p6), %s276_s13, 2048, %s278_s6, %s266_s16, %s1447_s25, %s1447_s25, %s1448_s28  }
  0x2c   : > { %289 = sbr.rel (%p1571_p12) target bundleno = 440 (0x1b8), region = 40 }
  0x31   : > { %1404 = dma.done.wait (%p82_p8), [#allocation4], 256  }
  0x32   : > { %1406 = vsyncadd (%p82_p8), [#allocation4], 4294967040  ;;  %s296_s0 = sand.u32 1, %s1555_s27   ;;  %s298_s1 = sand.u32 1, %s1425_s19  }
  0x33   : > { %s942_s20 = sshll.u32 %s298_s1, 7  ;;  %s297_s23 = scalar_lea.sflag [#allocation7], %s296_s0 }
  0x34   : > { %s1604_s24 = scalar_lea.vmem [#allocation6], %s942_s20 }
  0x35   : > { %1408 = dma.done.wait (%p1564_p11), %s297_s23, 2080  }
  0x36   : > { %1410 = vsyncadd (%p1564_p11), %s297_s23, 4294965216  ;;  %s943_s29 = sshll.u32 %s298_s1, 1  ;;  %s317_s7 = scalar_lea.sflag [#allocation10], %s298_s1 }
  0x37   : > { %s1610_s6 = scalar_lea.vmem [#allocation8], %s943_s29  ;;  %s1612_s14 = scalar_lea.vmem [#allocation9], %s942_s20 }
  0x38   : > { %1412 = dma.done.wait (%p1564_p11), %s317_s7, 2048  }
  0x39   : > { %1414 = vsyncadd (%p1564_p11), %s317_s7, 4294965248  ;;  %p945_p1 = scmp.ne.s32.totalorder %s1433_s21, 0 }
  0x3b   : > { %361 = sbr.rel (%p945_p1) target bundleno = 69 (0x45), region = 60 }
  0x40   : > { %v1449_v0 = vmov 0.0  }
  0x41   : > { %362 = vst [vmem:[#allocation2 + $0x10] sm:$0xff] %v1449_v0 }
  0x42   : > { %363 = vst [vmem:[#allocation2] sm:$0xff] %v1449_v0 }
  0x43   : > { %364 = vst [vmem:[#allocation2 + $0x18] sm:$0xff] %v1449_v0 }
  0x44   : > { %365 = vst [vmem:[#allocation2 + $0x8] sm:$0xff] %v1449_v0 }
  0x45 PF: > { %v1012_v1 = vld [vmem:[%s1604_s24 + $0x70] sm:$0xf]  ;;  %v1106_v2 = vld [vmem:[%s1604_s24 + $0x74] sm:$0xf0]  ;;  %v1105_v3 = vld [vmem:[%s1604_s24 + $0x74] sm:$0xf] }
  0x46   : > { %v1013_v4 = vor.u32 %v1106_v2, %v1012_v1  ;;  %v1014_v5 = vld [vmem:[%s1604_s24 + $0x78] sm:$0xf0]  ;;  %v1004_v6 = vld [vmem:[%s1604_s24 + $0x60] sm:$0xf]  ;;  %v1104_v7 = vld [vmem:[%s1604_s24 + $0x64] sm:$0xf0] }
  0x47   : > { %v1017_v8 = vor.u32 %v1105_v3, %v1014_v5  ;;  %v1103_v9 = vld [vmem:[%s1604_s24 + $0x64] sm:$0xf]  ;;  %v1006_v10 = vld [vmem:[%s1604_s24 + $0x68] sm:$0xf0]  ;;  %v1005_v11 = vor.u32 %v1104_v7, %v1004_v6  ;;  %v996_v13 = vld [vmem:[%s1604_s24 + $0x50] sm:$0xf] }
  0x48   : > { %484 = vmatpush.bf16.msra.mxu0 %v1013_v4  ;;  %v1009_v12 = vor.u32 %v1103_v9, %v1006_v10  ;;  %v1102_v14 = vld [vmem:[%s1604_s24 + $0x54] sm:$0xf0]  ;;  %v1101_v15 = vld [vmem:[%s1604_s24 + $0x54] sm:$0xf]  ;;  %v998_v16 = vld [vmem:[%s1604_s24 + $0x58] sm:$0xf0] }
  0x49   : > { %503 = vmatpush.bf16.msra.mxu1 %v1017_v8  ;;  %v997_v17 = vor.u32 %v1102_v14, %v996_v13  ;;  %v1001_v18 = vor.u32 %v1101_v15, %v998_v16  ;;  %v988_v19 = vld [vmem:[%s1604_s24 + $0x40] sm:$0xf]  ;;  %v1100_v20 = vld [vmem:[%s1604_s24 + $0x44] sm:$0xf0]  ;;  %v1099_v21 = vld [vmem:[%s1604_s24 + $0x44] sm:$0xf] }
  0x4a   : > { %v990_v22 = vld [vmem:[%s1604_s24 + $0x48] sm:$0xf0]  ;;  %v989_v23 = vor.u32 %v1100_v20, %v988_v19  ;;  %v980_v25 = vld [vmem:[%s1604_s24 + $0x30] sm:$0xf]  ;;  %v1098_v26 = vld [vmem:[%s1604_s24 + $0x34] sm:$0xf0] }
  0x4b   : > { %v993_v24 = vor.u32 %v1099_v21, %v990_v22  ;;  %v1097_v27 = vld [vmem:[%s1604_s24 + $0x34] sm:$0xf]  ;;  %v982_v28 = vld [vmem:[%s1604_s24 + $0x38] sm:$0xf0]  ;;  %v981_v29 = vor.u32 %v1098_v26, %v980_v25  ;;  %v972_v31 = vld [vmem:[%s1604_s24 + $0x20] sm:$0xf] }
  0x4c   : > { %485 = vmatpush.bf16.msra.mxu0 %v1005_v11  ;;  %v985_v30 = vor.u32 %v1097_v27, %v982_v28  ;;  %v1096_v32 = vld [vmem:[%s1604_s24 + $0x24] sm:$0xf0]  ;;  %v1095_v33 = vld [vmem:[%s1604_s24 + $0x24] sm:$0xf]  ;;  %v974_v34 = vld [vmem:[%s1604_s24 + $0x28] sm:$0xf0] }
  0x4d   : > { %504 = vmatpush.bf16.msra.mxu1 %v1009_v12  ;;  %v973_v35 = vor.u32 %v1096_v32, %v972_v31  ;;  %v977_v36 = vor.u32 %v1095_v33, %v974_v34  ;;  %v964_v37 = vld [vmem:[%s1604_s24 + $0x10] sm:$0xf]  ;;  %v1094_v38 = vld [vmem:[%s1604_s24 + $0x14] sm:$0xf0]  ;;  %v1093_v39 = vld [vmem:[%s1604_s24 + $0x14] sm:$0xf] }
  0x4e   : > { %v966_v40 = vld [vmem:[%s1604_s24 + $0x18] sm:$0xf0]  ;;  %v965_v41 = vor.u32 %v1094_v38, %v964_v37  ;;  %v956_v43 = vld [vmem:[%s1604_s24] sm:$0xf]  ;;  %v1092_v44 = vld [vmem:[%s1604_s24 + $0x4] sm:$0xf0] }
  0x4f   : > { %v969_v42 = vor.u32 %v1093_v39, %v966_v40  ;;  %v1091_v45 = vld [vmem:[%s1604_s24 + $0x4] sm:$0xf]  ;;  %v958_v46 = vld [vmem:[%s1604_s24 + $0x8] sm:$0xf0]  ;;  %v957_v47 = vor.u32 %v1092_v44, %v956_v43  ;;  %v1089_v49 = vld [vmem:[#allocation3] sm:$0xff]  ;;  %p1082_p2 = scmp.ne.s32.totalorder %s1433_s21, 1 }
  0x50   : > { %486 = vmatpush.bf16.msra.mxu0 %v997_v17  ;;  %v961_v48 = vor.u32 %v1091_v45, %v958_v46  ;;  %v1090_v50 = vld [vmem:[#allocation3 + $0x8] sm:$0xff]  ;;  %v1112_v55 = vld [vmem:[%s1612_s14 + $0x28] sm:$0xff]  ;;  %v1111_v57 = vld [vmem:[%s1612_s14 + $0x20] sm:$0xff] }
  0x51   : > { %505 = vmatpush.bf16.msra.mxu1 %v1001_v18  ;;  %v1114_v51 = vld [vmem:[%s1612_s14 + $0x38] sm:$0xff]  ;;  %v1113_v53 = vld [vmem:[%s1612_s14 + $0x30] sm:$0xff]  ;;  %v1120_v56 = vld [vmem:[%s1612_s14 + $0x68] sm:$0xff] }
  0x52   : > { %v1122_v52 = vld [vmem:[%s1612_s14 + $0x78] sm:$0xff]  ;;  %730 = vmatpush.bf16.msra.mxu2 %v1114_v51  ;;  %v1121_v54 = vld [vmem:[%s1612_s14 + $0x70] sm:$0xff]  ;;  %v1119_v58 = vld [vmem:[%s1612_s14 + $0x60] sm:$0xff] }
  0x53   : > { %749 = vmatpush.bf16.msra.mxu3 %v1122_v52  ;;  %v1110_v59 = vld [vmem:[%s1612_s14 + $0x18] sm:$0xff]  ;;  %v1109_v61 = vld [vmem:[%s1612_s14 + $0x10] sm:$0xff]  ;;  %v1108_v0 = vld [vmem:[%s1612_s14 + $0x8] sm:$0xff] }
  0x54   : > { %487 = vmatpush.bf16.msra.mxu0 %v989_v23  ;;  %v1118_v60 = vld [vmem:[%s1612_s14 + $0x58] sm:$0xff]  ;;  %v1117_v62 = vld [vmem:[%s1612_s14 + $0x50] sm:$0xff]  ;;  %v1116_v1 = vld [vmem:[%s1612_s14 + $0x48] sm:$0xff] }
  0x55   : > { %506 = vmatpush.bf16.msra.mxu1 %v993_v24  ;;  %v386_v63 = vld [vmem:[%s1610_s6] sm:$0x3]  ;;  %v1107_v2 = vld [vmem:[%s1612_s14] sm:$0xff] }
  0x56   : > { %731 = vmatpush.bf16.msra.mxu2 %v1113_v53  ;;  %v1115_v3 = vld [vmem:[%s1612_s14 + $0x40] sm:$0xff]  ;;  %v388_v4 = vperm.slane %v386_v63, 0  ;;  %v389_v5 = vperm.slane %v386_v63, 1 }
  0x57   : > { %750 = vmatpush.bf16.msra.mxu3 %v1121_v54 }
  0x58   : > { %488 = vmatpush.bf16.msra.mxu0 %v981_v29 }
  0x59   : > { %507 = vmatpush.bf16.msra.mxu1 %v985_v30 }
  0x5a   : > { %732 = vmatpush.bf16.msra.mxu2 %v1112_v55 }
  0x5b   : > { %751 = vmatpush.bf16.msra.mxu3 %v1120_v56 }
  0x5c   : > { %489 = vmatpush.bf16.msra.mxu0 %v973_v35 }
  0x5d   : > { %508 = vmatpush.bf16.msra.mxu1 %v977_v36 }
  0x5e   : > { %733 = vmatpush.bf16.msra.mxu2 %v1111_v57 }
  0x5f   : > { %752 = vmatpush.bf16.msra.mxu3 %v1119_v58 }
  0x60   : > { %490 = vmatpush.bf16.msra.mxu0 %v965_v41 }
  0x61   : > { %509 = vmatpush.bf16.msra.mxu1 %v969_v42 }
  0x62   : > { %734 = vmatpush.bf16.msra.mxu2 %v1110_v59 }
  0x63   : > { %753 = vmatpush.bf16.msra.mxu3 %v1118_v60 }
  0x64   : > { %491 = vmatpush.bf16.msra.mxu0 %v957_v47 }
  0x65   : > { %510 = vmatpush.bf16.msra.mxu1 %v961_v48 }
  0x66   : > { %735 = vmatpush.bf16.msra.mxu2 %v1109_v61 }
  0x67   : > { %492 = vmatmul.bf16.vlgmr.msra.gmra.mxu0 %v1089_v49  ;;  %754 = vmatpush.bf16.msra.mxu3 %v1117_v62 }
  0x68   : > { %511 = vmatmul.bf16.vlgmr.msra.gmra.mxu1 %v1089_v49 }
  0x6a   : > { %736 = vmatpush.bf16.msra.mxu2 %v1108_v0 }
  0x6b   : > { %755 = vmatpush.bf16.msra.mxu3 %v1116_v1 }
  0x6e   : > { %737 = vmatpush.bf16.msra.mxu2 %v1107_v2 }
  0x6f   : > { %756 = vmatpush.bf16.msra.mxu3 %v1115_v3 }
  0x77   : > { %497 = vmatmul.bf16.gmra.mxu0 %v1090_v50 }
  0x78   : > { %516 = vmatmul.bf16.gmra.mxu1 %v1090_v50 }
  0xe4   : > { %v493_v6 = vpop.f32.mrf.mxu0 }
  0xe5   : > { %v494_v7 = vadd.f32 %v493_v6, %v388_v4  ;;  %v512_v8 = vpop.f32.mrf.mxu1 }
  0xe6   : > { %v513_v9 = vadd.f32 %v512_v8, %v389_v5 }
  0xe7   : > { %v530_v10 = vmul.f32 0.044715, %v494_v7  ;;  %v522_v55 = vmul.f32 0.5, %v494_v7 }
  0xe8   : > { %v531_v11 = vmul.f32 0.044715, %v513_v9  ;;  %v523_v61 = vmul.f32 0.5, %v513_v9 }
  0xe9   : > { %v538_v12 = vmul.f32 %v530_v10, %v494_v7 }
  0xea   : > { %v539_v13 = vmul.f32 %v531_v11, %v513_v9 }
  0xeb   : > { %v546_v14 = vmul.f32 %v538_v12, %v494_v7 }
  0xec   : > { %v495_v15 = vpop.f32.mrf.mxu0  ;;  %v547_v16 = vmul.f32 %v539_v13, %v513_v9 }
  0xed   : > { %v496_v17 = vadd.f32 %v495_v15, %v388_v4  ;;  %v514_v18 = vpop.f32.mrf.mxu1  ;;  %v554_v19 = vadd.f32 %v546_v14, %v494_v7 }
  0xee   : > { %v515_v20 = vadd.f32 %v514_v18, %v389_v5  ;;  %v555_v21 = vadd.f32 %v547_v16, %v513_v9 }
  0xef   : > { %v532_v22 = vmul.f32 0.044715, %v496_v17  ;;  %v562_v25 = vmul.f32 0.7978846, %v554_v19  ;;  %v524_v59 = vmul.f32 0.5, %v496_v17 }
  0xf0   : > { %v533_v23 = vmul.f32 0.044715, %v515_v20  ;;  %v563_v27 = vmul.f32 0.7978846, %v555_v21  ;;  %v525_v62 = vmul.f32 0.5, %v515_v20 }
  0xf1   : > { %v540_v24 = vmul.f32 %v532_v22, %v496_v17  ;;  %1214 = vtanh.f32 %v562_v25 }
  0xf2   : > { %v541_v26 = vmul.f32 %v533_v23, %v515_v20  ;;  %1216 = vtanh.f32 %v563_v27 }
  0xf3   : > { %v548_v28 = vmul.f32 %v540_v24, %v496_v17 }
  0xf4   : > { %v498_v29 = vpop.f32.mrf.mxu0  ;;  %v549_v30 = vmul.f32 %v541_v26, %v515_v20 }
  0xf5   : > { %v1668_v31 = vadd.f32 %v498_v29, %v388_v4  ;;  %v517_v32 = vpop.f32.mrf.mxu1  ;;  %v556_v33 = vadd.f32 %v548_v28, %v496_v17 }
  0xf6   : > { %v1670_v34 = vadd.f32 %v517_v32, %v389_v5  ;;  %v557_v35 = vadd.f32 %v549_v30, %v515_v20 }
  0xf7   : > { %v534_v36 = vmul.f32 0.044715, %v1668_v31  ;;  %v564_v37 = vmul.f32 0.7978846, %v556_v33  ;;  %v1215_v42 = vpop.eup %1214  ;;  %v526_v22 = vmul.f32 0.5, %v1668_v31 }
  0xf8   : > { %v535_v38 = vmul.f32 0.044715, %v1670_v34  ;;  %v565_v39 = vmul.f32 0.7978846, %v557_v35  ;;  %v1217_v44 = vpop.eup %1216  ;;  %v578_v51 = vadd.f32 1.0, %v1215_v42  ;;  %v527_v25 = vmul.f32 0.5, %v1670_v34 }
  0xf9   : > { %1218 = vtanh.f32 %v564_v37  ;;  %v542_v40 = vmul.f32 %v534_v36, %v1668_v31  ;;  %v579_v56 = vadd.f32 1.0, %v1217_v44  ;;  %v598_v37 = vld [vmem:[#allocation2 + $0x10] sm:$0xff] }
  0xfa   : > { %1220 = vtanh.f32 %v565_v39  ;;  %v543_v41 = vmul.f32 %v535_v38, %v1670_v34  ;;  %v586_v2 = vmul.f32 %v578_v51, %v522_v55 }
  0xfb   : > { %v550_v43 = vmul.f32 %v542_v40, %v1668_v31  ;;  %v587_v6 = vmul.f32 %v579_v56, %v523_v61 }
  0xfc   : > { %v500_v45 = vpop.f32.mrf.mxu0  ;;  %v551_v46 = vmul.f32 %v543_v41, %v1670_v34  ;;  %v599_v41 = vld [vmem:[#allocation2] sm:$0xff] }
  0xfd   : > { %v501_v47 = vadd.f32 %v500_v45, %v388_v4  ;;  %v519_v48 = vpop.f32.mrf.mxu1  ;;  %v558_v49 = vadd.f32 %v550_v43, %v1668_v31  ;;  %v600_v45 = vld [vmem:[#allocation2 + $0x18] sm:$0xff] }
  0xfe   : > { %v520_v50 = vadd.f32 %v519_v48, %v389_v5  ;;  %v559_v52 = vadd.f32 %v551_v46, %v1670_v34 }
  0xff   : > { %v1219_v53 = vpop.eup %1218  ;;  %v536_v54 = vmul.f32 0.044715, %v501_v47  ;;  %v566_v1 = vmul.f32 0.7978846, %v558_v49  ;;  %v528_v23 = vmul.f32 0.5, %v501_v47 }
 0x100   : > { %v1221_v57 = vpop.eup %1220  ;;  %v537_v58 = vmul.f32 0.044715, %v520_v50  ;;  %v580_v60 = vadd.f32 1.0, %v1219_v53  ;;  %v567_v5 = vmul.f32 0.7978846, %v559_v52  ;;  %v529_v26 = vmul.f32 0.5, %v520_v50 }
 0x101   : > { %v581_v63 = vadd.f32 1.0, %v1221_v57  ;;  %v544_v0 = vmul.f32 %v536_v54, %v501_v47  ;;  %1222 = vtanh.f32 %v566_v1 }
 0x102   : > { %v588_v3 = vmul.f32 %v580_v60, %v524_v59  ;;  %v545_v4 = vmul.f32 %v537_v58, %v520_v50  ;;  %1224 = vtanh.f32 %v567_v5 }
 0x103   : > { %v589_v8 = vmul.f32 %v581_v63, %v525_v62  ;;  %v552_v10 = vmul.f32 %v544_v0, %v501_v47 }
 0x104   : > { %v594_v11 = vpack.c.bf16 %v588_v3, %v586_v2  ;;  %v553_v12 = vmul.f32 %v545_v4, %v520_v50 }
 0x105   : > { %v595_v7 = vpack.c.bf16 %v589_v8, %v587_v6  ;;  %v560_v13 = vadd.f32 %v552_v10, %v501_v47 }
 0x106   : > { %738 = vmatmul.bf16.vlgmr.msra.gmra.mxu2 %v594_v11  ;;  %v561_v14 = vadd.f32 %v553_v12, %v520_v50  ;;  %v601_v50 = vld [vmem:[#allocation2 + $0x8] sm:$0xff] }
 0x107   : > { %757 = vmatmul.bf16.vlgmr.msra.gmra.mxu3 %v595_v7  ;;  %v568_v9 = vmul.f32 0.7978846, %v560_v13  ;;  %v1223_v16 = vpop.eup %1222 }
 0x108   : > { %v569_v15 = vmul.f32 0.7978846, %v561_v14  ;;  %v1225_v17 = vpop.eup %1224  ;;  %v582_v18 = vadd.f32 1.0, %v1223_v16 }
 0x109   : > { %1226 = vtanh.f32 %v568_v9  ;;  %v583_v20 = vadd.f32 1.0, %v1225_v17 }
 0x10a   : > { %1228 = vtanh.f32 %v569_v15  ;;  %v590_v28 = vmul.f32 %v582_v18, %v526_v22 }
 0x10b   : > { %v591_v30 = vmul.f32 %v583_v20, %v527_v25 }
 0x10f   : > { %v1227_v19 = vpop.eup %1226 }
 0x110   : > { %v1229_v21 = vpop.eup %1228  ;;  %v584_v24 = vadd.f32 1.0, %v1227_v19 }
 0x111   : > { %v585_v27 = vadd.f32 1.0, %v1229_v21 }
 0x112   : > { %v592_v29 = vmul.f32 %v584_v24, %v528_v23 }
 0x113   : > { %v593_v32 = vmul.f32 %v585_v27, %v529_v26 }
 0x114   : > { %v596_v33 = vpack.c.bf16 %v592_v29, %v590_v28 }
 0x115   : > { %v597_v35 = vpack.c.bf16 %v593_v32, %v591_v30 }
 0x116   : > { %743 = vmatmul.bf16.gmra.mxu2 %v596_v33 }
 0x117   : > { %762 = vmatmul.bf16.gmra.mxu3 %v597_v35 }
 0x189   : > { %v739_v36 = vpop.f32.mrf.mxu2 }
 0x18a   : > { %v758_v38 = vpop.f32.mrf.mxu3 }
 0x18b   : > { %v759_v39 = vadd.f32 %v758_v38, %v739_v36 }
 0x18d   : > { %v768_v40 = vadd.f32 %v759_v39, %v598_v37 }
 0x18f   : > { %772 = vst [vmem:[#allocation2 + $0x10] sm:$0xff] %v768_v40 }
 0x191   : > { %v741_v31 = vpop.f32.mrf.mxu2 }
 0x192   : > { %v760_v42 = vpop.f32.mrf.mxu3 }
 0x193   : > { %v761_v34 = vadd.f32 %v760_v42, %v741_v31 }
 0x195   : > { %v769_v43 = vadd.f32 %v761_v34, %v599_v41 }
 0x197   : > { %773 = vst [vmem:[#allocation2] sm:$0xff] %v769_v43 }
 0x199   : > { %v744_v44 = vpop.f32.mrf.mxu2 }
 0x19a   : > { %v763_v46 = vpop.f32.mrf.mxu3 }
 0x19b   : > { %v764_v47 = vadd.f32 %v763_v46, %v744_v44 }
 0x19d   : > { %v770_v48 = vadd.f32 %v764_v47, %v600_v45 }
 0x19f   : > { %774 = vst [vmem:[#allocation2 + $0x18] sm:$0xff] %v770_v48 }
 0x1a1   : > { %v746_v49 = vpop.f32.mrf.mxu2 }
 0x1a2   : > { %v765_v51 = vpop.f32.mrf.mxu3 }
 0x1a3   : > { %v766_v52 = vadd.f32 %v765_v51, %v746_v49  ;;  %779 = sbr.rel (%p1082_p2) target bundleno = 434 (0x1b2), region = 64 }
 0x1a5   : > { %v771_v53 = vadd.f32 %v766_v52, %v601_v50 }
 0x1a7   : > { %775 = vst [vmem:[#allocation2 + $0x8] sm:$0xff] %v771_v53 }
 0x1a8   : > { %v780_v54 = vld [vmem:[#allocation2 + $0x10] sm:$0xff]  ;;  %v1230_v55 = vld [vmem:[%s1712_s4] ss:$0 sm:$0xff]  ;;  %v782_v57 = vld [vmem:[#allocation2 + $0x18] sm:$0xff] }
 0x1a9   : > { %v781_v56 = vld [vmem:[#allocation2] sm:$0xff]  ;;  %v788_v59 = vadd.f32 %v1230_v55, %v780_v54  ;;  %v790_v61 = vadd.f32 %v1230_v55, %v782_v57 }
 0x1aa   : > { %v789_v60 = vadd.f32 %v1230_v55, %v781_v56 }
 0x1ab   : > { %792 = vst [vmem:[#allocation11] sm:$0xff] %v788_v59 }
 0x1ac   : > { %793 = vst [vmem:[#allocation11 + $0x8] sm:$0xff] %v789_v60 }
 0x1ad   : > { %794 = vst [vmem:[#allocation11 + $0x10] sm:$0xff] %v790_v61 }
 0x1ae   : > { %v783_v58 = vld [vmem:[#allocation2 + $0x8] sm:$0xff] }
 0x1af   : > { %v791_v62 = vadd.f32 %v1230_v55, %v783_v58 }
 0x1b1   : > { %795 = vst [vmem:[#allocation11 + $0x18] sm:$0xff] %v791_v62 }
 0x1b2 PF: > { %p1154_p3 = scmp.eq.s32.totalorder %s1555_s27, 1  ;;  %s806_s9 = sshll.u32 %s1713_s5, 4  ;;  %s807_s9 = int_to_ptr.hbm [resolvable:$true] %s806_s9 }
 0x1b3   : > { %s1450_s10 = smov [#allocation11]   ;;  %s1451_s17 = smov 128  }
 0x1b4   : > { %s804_s11 = sshll.u32 %s1450_s10, 4  ;;  %s1452_s25 = smov 8   ;;  %s805_s11 = int_to_ptr.vmem [resolvable:$true] %s804_s11 }
 0x1b5   : > { %1134 = dma.vmem_to_hbm [thread:$0]  (%p1154_p3), %s805_s11, 512, %s807_s9, [#allocation5], %s1451_s17, %s1451_s17, %s1452_s25  }
 0x1b6   : > { %1416 = dma.done.wait (%p1154_p3), [#allocation5], 512  }
 0x1b7   : > { %1418 = vsyncadd (%p1154_p3), [#allocation5], 4294966784 }
 0x1b8 PF: > { %s1731_s28 = sld [smem:[#allocation17_spill]]  ;;  %s1735_s18 = smov %s1425_s19 }
 0x1b9   : > { %s1732_s30 = sld [smem:[#allocation16_spill]]  ;;  %s1737_s21 = smov %s1437_s22 }
 0x1ba   : > { %s1733_s20 = sld [smem:[#allocation19_spill]] }
 0x1bb   : > { %s1734_s27 = sld [smem:[#allocation18_spill]] }
 0x1be   : > { %s23_s23 = sadd.s32 1, %s1731_s28  }
 0x1bf   : > { %p20_p4 = scmp.ge.s32.totalorder %s23_s23, 4   ;;  %s1736_s19 = smov %s1732_s30 }
 0x1c1   : > { %s1738_s22 = smov %s1734_s27  ;;  %22 = sbr.rel (!%p20_p4) target bundleno = 11 (0xb), region = 116 }
 0x1c6   :  { %823 = vsyncpa [#allocation4], 1 }
 0x1c7   :  { %825 = vsyncpa [#allocation4 + $0x1], 1 }
 0x1c8   :  { %826 = vsyncpa [#allocation7], 1 }
 0x1c9   :  { %828 = vsyncpa [#allocation7 + $0x1], 1 }
 0x1ca   :  { %829 = vsyncpa [#allocation10], 1 }
 0x1cb   :  { %831 = vsyncpa [#allocation10 + $0x1], 1 }
 0x1cc   :  { %832 = vsyncpa [#allocation5], 1 }
 0x1cd   :  { %834 = vsyncpa [#allocation5 + $0x1], 1 }

</bundles_post_ra>
